<compile_context>
chip_gen: v7x
topology: tpu7x:2x2x1
jax: 0.10.0
libtpu: 0.0.40
codegen_flags: <defaults>
</compile_context>

<pallas_src>
import jax
import jax.numpy as jnp
from jax.experimental import pallas as pl
from jax.experimental.pallas import tpu as pltpu


def _round_up(n, m):
    return ((n + m - 1) // m) * m


def _disc_kernel(xin_ref,
                 w1_ref, b1_ref,
                 w2_ref, b2_ref,
                 w3_ref, b3_ref,
                 w4_ref, b4_ref,
                 out_ref):
    """Full 4-layer MLP forward for one batch tile, entirely in VMEM."""
    f32 = jnp.float32
    bf16 = jnp.bfloat16

    def leaky_relu(h):
        # exact for slope 0.2 > 0; one VALU op cheaper than cmp+mul+select.
        return jnp.maximum(h, 0.2 * h)

    # Packed [x | theta_flat | zeros] input, single K=K_pad matmul for layer 1.
    h0 = xin_ref[...].astype(bf16)                                    # (TB, K_pad)
    h1 = leaky_relu(jnp.dot(h0, w1_ref[...],
                            preferred_element_type=f32) + b1_ref[...])  # (TB, 512)

    h2 = leaky_relu(jnp.dot(h1.astype(bf16), w2_ref[...],
                            preferred_element_type=f32) + b2_ref[...])  # (TB, 256)

    h3 = leaky_relu(jnp.dot(h2.astype(bf16), w3_ref[...],
                            preferred_element_type=f32) + b3_ref[...])  # (TB, 128)

    # final 128 -> 1 layer as a VPU multiply + lane (XLU) reduction instead of
    # an N=1 MXU matmul; bias is a scalar read from SMEM.
    h4 = jnp.sum(h3 * w4_ref[...], axis=-1, keepdims=True) + b4_ref[0]  # (TB, 1)

    out_ref[...] = jax.nn.sigmoid(h4).astype(out_ref.dtype)


def prepare_params(params):
    """One-time conversion of f32 PyTorch-style params into kernel-ready arrays.

    Hoisted out of the forward call so no per-call casts / pads hit HBM.
    """
    (w1, b1), (w2, b2), (w3, b3), (w4, b4) = params
    din = w1.shape[0]
    k_pad = _round_up(max(din, 16), 16)   # clean bf16 sublane layout

    w1p = jnp.pad(w1, ((0, k_pad - din), (0, 0))).astype(jnp.bfloat16)  # (K_pad, 512)
    w2b = w2.astype(jnp.bfloat16)                                       # (512, 256)
    w3b = w3.astype(jnp.bfloat16)                                       # (256, 128)
    w4r = w4.reshape(1, -1)                                             # (1, 128) f32
    b1r = b1.reshape(1, -1)
    b2r = b2.reshape(1, -1)
    b3r = b3.reshape(1, -1)
    b4s = b4.reshape(1)                                                 # SMEM scalar
    return dict(din=din, k_pad=k_pad, w1=w1p, b1=b1r, w2=w2b, b2=b2r,
                w3=w3b, b3=b3r, w4=w4r, b4=b4s)


def discriminator_forward(theta, x, kparams, *, tb_target=1024):
    """theta: (B, k, theta_dim) f32, x: (B, x_dim) f32 -> validity (B, 1) f32."""
    B = theta.shape[0]
    theta_flat = theta.reshape(B, -1)
    din = x.shape[-1] + theta_flat.shape[-1]
    assert din == kparams["din"], "param / input dim mismatch"
    k_pad = kparams["k_pad"]

    # Batch tiling: TB multiple of 8 (sublane), capped at tb_target; clamp so
    # there are >= 2 batch tiles whenever there is work to split (v7x has two
    # TensorCores sharding the "parallel" batch axis; on v5e/v6e the extra
    # grid step costs ~0.35us, negligible).
    TB = min(tb_target, _round_up(B, 8))
    if B > 8:
        TB = min(TB, _round_up(pl.cdiv(B, 2), 8))
    G = pl.cdiv(B, TB)
    B_pad = G * TB

    # Pack [x | theta_flat] and zero-pad K to k_pad and batch to B_pad.
    xin = jnp.concatenate([x, theta_flat], axis=-1)
    xin = jnp.pad(xin, ((0, B_pad - B), (0, k_pad - din)))

    full = lambda shape: pl.BlockSpec(shape, lambda i: (0, 0))

    out = pl.pallas_call(
        _disc_kernel,
        out_shape=jax.ShapeDtypeStruct((B_pad, 1), jnp.float32),
        grid=(G,),
        in_specs=[
            pl.BlockSpec((TB, k_pad), lambda i: (i, 0)),        # packed input tile
            full((k_pad, 512)), full((1, 512)),
            full((512, 256)), full((1, 256)),
            full((256, 128)), full((1, 128)),
            full((1, 128)),                                     # w4 row (VPU path)
            pl.BlockSpec(memory_space=pltpu.MemorySpace.SMEM),  # b4 scalar
        ],
        # output last-dim is 1 (masked vst); total output traffic is B*4 bytes,
        # so the lane-dense-output rework is not worth the transpose here.
        out_specs=pl.BlockSpec((TB, 1), lambda i: (i, 0)),
        compiler_params=pltpu.CompilerParams(
            dimension_semantics=("parallel",),
            vmem_limit_bytes=32 << 20),   # headroom for TB=1024 on v5e's 16MiB default
    )(xin, kparams["w1"], kparams["b1"], kparams["w2"], kparams["b2"],
      kparams["w3"], kparams["b3"], kparams["w4"], kparams["b4"])
    return out[:B]


def init_params(key, x_dim, theta_dim, k):
    """Deterministic init matching PyTorch Linear shapes (stored transposed)."""
    din = x_dim + k * theta_dim
    dims = [(din, 512), (512, 256), (256, 128), (128, 1)]
    params = []
    for (fan_in, fan_out) in dims:
        key, kw, kb = jax.random.split(key, 3)
        bound = 1.0 / (fan_in ** 0.5)
        w = jax.random.uniform(kw, (fan_in, fan_out), jnp.float32, -bound, bound)
        b = jax.random.uniform(kb, (fan_out,), jnp.float32, -bound, bound)
        params.append((w, b))
    return params


def reference_forward(theta, x, params):
    """Plain-JAX reference using the same bf16-matmul / f32-accumulate recipe."""
    B = theta.shape[0]
    h = jnp.concatenate([x, theta.reshape(B, -1)], axis=-1)
    (w1, b1), (w2, b2), (w3, b3), (w4, b4) = params
    for w, b in ((w1, b1), (w2, b2), (w3, b3)):
        h = jnp.dot(h.astype(jnp.bfloat16), w.astype(jnp.bfloat16),
                    preferred_element_type=jnp.float32) + b
        h = jnp.where(h > 0, h, 0.2 * h)
    h = h @ w4 + b4
    return jax.nn.sigmoid(h)


if __name__ == "__main__":
    # small shapes consistent with the module: batch=8, x_dim=16, theta_dim=2, k=3
    B, x_dim, theta_dim, k = 8, 16, 2, 3

    key = jax.random.PRNGKey(0)
    key, kt, kx = jax.random.split(key, 3)
    theta = jax.random.normal(kt, (B, k, theta_dim), jnp.float32)
    x = jax.random.normal(kx, (B, x_dim), jnp.float32)

    params = init_params(key, x_dim, theta_dim, k)
    kparams = prepare_params(params)          # one-time bf16 cast / W1 pad

    validity = discriminator_forward(theta, x, kparams)
    jax.block_until_ready(validity)

    ref = reference_forward(theta, x, params)
    assert validity.shape == (B, 1)
    assert jnp.allclose(validity, ref, atol=2e-3, rtol=2e-3), float(
        jnp.max(jnp.abs(validity - ref)))

    # Also exercise the tiled / padded path (grid > 1, B not divisible by TB).
    B2 = 300
    key, kt2, kx2 = jax.random.split(key, 3)
    theta2 = jax.random.normal(kt2, (B2, k, theta_dim), jnp.float32)
    x2 = jax.random.normal(kx2, (B2, x_dim), jnp.float32)
    v2 = discriminator_forward(theta2, x2, kparams)
    jax.block_until_ready(v2)
    ref2 = reference_forward(theta2, x2, params)
    assert v2.shape == (B2, 1)
    assert jnp.allclose(v2, ref2, atol=2e-3, rtol=2e-3), float(
        jnp.max(jnp.abs(v2 - ref2)))

    print("KERNEL_OK")
</pallas_src>

<mosaic_0001>
module attributes {stable_mosaic.version = 11 : i64} {
  func.func @_disc_kernel(%arg0: i32, %arg1: memref<8x32xf32, #tpu.memory_space<vmem>>, %arg2: memref<32x512xbf16, #tpu.memory_space<vmem>>, %arg3: memref<1x512xf32, #tpu.memory_space<vmem>>, %arg4: memref<512x256xbf16, #tpu.memory_space<vmem>>, %arg5: memref<1x256xf32, #tpu.memory_space<vmem>>, %arg6: memref<256x128xbf16, #tpu.memory_space<vmem>>, %arg7: memref<1x128xf32, #tpu.memory_space<vmem>>, %arg8: memref<1x128xf32, #tpu.memory_space<vmem>>, %arg9: memref<1xf32, #tpu.memory_space<smem>>, %arg10: memref<8x1xf32, #tpu.memory_space<vmem>>) attributes {dimension_semantics = [#tpu.dimension_semantics<parallel>], iteration_bounds = array<i64: 1>, scalar_prefetch = 0 : i64, scratch_operands = 0 : i64, tpu.core_type = #tpu.core_type<tc>, window_params = [{transform_indices = @transform_0, window_bounds = array<i64: 8, 32>}, {pipeline_mode = #tpu.pipeline_mode<synchronous>, transform_indices = @transform_1, window_bounds = array<i64: 32, 512>}, {pipeline_mode = #tpu.pipeline_mode<synchronous>, transform_indices = @transform_2, window_bounds = array<i64: 1, 512>}, {pipeline_mode = #tpu.pipeline_mode<synchronous>, transform_indices = @transform_3, window_bounds = array<i64: 512, 256>}, {pipeline_mode = #tpu.pipeline_mode<synchronous>, transform_indices = @transform_4, window_bounds = array<i64: 1, 256>}, {pipeline_mode = #tpu.pipeline_mode<synchronous>, transform_indices = @transform_5, window_bounds = array<i64: 256, 128>}, {pipeline_mode = #tpu.pipeline_mode<synchronous>, transform_indices = @transform_6, window_bounds = array<i64: 1, 128>}, {pipeline_mode = #tpu.pipeline_mode<synchronous>, transform_indices = @transform_7, window_bounds = array<i64: 1, 128>}, {transform_indices = @transform_8, window_bounds = array<i64: 1>}, {transform_indices = @transform_9, window_bounds = array<i64: 8, 1>}]} {
    %c0 = arith.constant 0 : index
    %c0_0 = arith.constant 0 : index
    %0 = vector.load %arg1[%c0, %c0_0] : memref<8x32xf32, #tpu.memory_space<vmem>>, vector<8x32xf32>
    %1 = arith.truncf %0 : vector<8x32xf32> to vector<8x32xbf16>
    %c0_1 = arith.constant 0 : index
    %c0_2 = arith.constant 0 : index
    %2 = vector.load %arg2[%c0_1, %c0_2] : memref<32x512xbf16, #tpu.memory_space<vmem>>, vector<32x512xbf16>
    %cst = arith.constant dense<0.000000e+00> : vector<8x512xf32>
    %3 = tpu.matmul %1, %2, %cst {dimension_numbers = #tpu.dot_dimension_numbers<[1], [0], [0], [1], [0, 0, 1, 1], [], []>} : vector<8x32xbf16>, vector<32x512xbf16>, vector<8x512xf32> -> vector<8x512xf32>
    %c0_3 = arith.constant 0 : index
    %c0_4 = arith.constant 0 : index
    %4 = vector.load %arg3[%c0_3, %c0_4] : memref<1x512xf32, #tpu.memory_space<vmem>>, vector<1x512xf32>
    %5 = vector.broadcast %4 : vector<1x512xf32> to vector<8x512xf32>
    %6 = arith.addf %3, %5 : vector<8x512xf32>
    %cst_5 = arith.constant 2.000000e-01 : f32
    %7 = vector.broadcast %cst_5 : f32 to vector<8x512xf32>
    %8 = arith.mulf %7, %6 : vector<8x512xf32>
    %9 = arith.maximumf %6, %8 : vector<8x512xf32>
    %10 = arith.truncf %9 : vector<8x512xf32> to vector<8x512xbf16>
    %c0_6 = arith.constant 0 : index
    %c0_7 = arith.constant 0 : index
    %11 = vector.load %arg4[%c0_6, %c0_7] : memref<512x256xbf16, #tpu.memory_space<vmem>>, vector<512x256xbf16>
    %cst_8 = arith.constant dense<0.000000e+00> : vector<8x256xf32>
    %12 = tpu.matmul %10, %11, %cst_8 {dimension_numbers = #tpu.dot_dimension_numbers<[1], [0], [0], [1], [0, 0, 1, 1], [], []>} : vector<8x512xbf16>, vector<512x256xbf16>, vector<8x256xf32> -> vector<8x256xf32>
    %c0_9 = arith.constant 0 : index
    %c0_10 = arith.constant 0 : index
    %13 = vector.load %arg5[%c0_9, %c0_10] : memref<1x256xf32, #tpu.memory_space<vmem>>, vector<1x256xf32>
    %14 = vector.broadcast %13 : vector<1x256xf32> to vector<8x256xf32>
    %15 = arith.addf %12, %14 : vector<8x256xf32>
    %cst_11 = arith.constant 2.000000e-01 : f32
    %16 = vector.broadcast %cst_11 : f32 to vector<8x256xf32>
    %17 = arith.mulf %16, %15 : vector<8x256xf32>
    %18 = arith.maximumf %15, %17 : vector<8x256xf32>
    %19 = arith.truncf %18 : vector<8x256xf32> to vector<8x256xbf16>
    %c0_12 = arith.constant 0 : index
    %c0_13 = arith.constant 0 : index
    %20 = vector.load %arg6[%c0_12, %c0_13] : memref<256x128xbf16, #tpu.memory_space<vmem>>, vector<256x128xbf16>
    %cst_14 = arith.constant dense<0.000000e+00> : vector<8x128xf32>
    %21 = tpu.matmul %19, %20, %cst_14 {dimension_numbers = #tpu.dot_dimension_numbers<[1], [0], [0], [1], [0, 0, 1, 1], [], []>} : vector<8x256xbf16>, vector<256x128xbf16>, vector<8x128xf32> -> vector<8x128xf32>
    %c0_15 = arith.constant 0 : index
    %c0_16 = arith.constant 0 : index
    %22 = vector.load %arg7[%c0_15, %c0_16] : memref<1x128xf32, #tpu.memory_space<vmem>>, vector<1x128xf32>
    %23 = vector.broadcast %22 : vector<1x128xf32> to vector<8x128xf32>
    %24 = arith.addf %21, %23 : vector<8x128xf32>
    %cst_17 = arith.constant 2.000000e-01 : f32
    %25 = vector.broadcast %cst_17 : f32 to vector<8x128xf32>
    %26 = arith.mulf %25, %24 : vector<8x128xf32>
    %27 = arith.maximumf %24, %26 : vector<8x128xf32>
    %c0_18 = arith.constant 0 : index
    %c0_19 = arith.constant 0 : index
    %28 = vector.load %arg8[%c0_18, %c0_19] : memref<1x128xf32, #tpu.memory_space<vmem>>, vector<1x128xf32>
    %29 = vector.broadcast %28 : vector<1x128xf32> to vector<8x128xf32>
    %30 = arith.mulf %27, %29 : vector<8x128xf32>
    %cst_20 = arith.constant dense<0.000000e+00> : vector<8xf32>
    %31 = vector.multi_reduction <add>, %30, %cst_20 [1] : vector<8x128xf32> to vector<8xf32>
    %32 = vector.shape_cast %31 : vector<8xf32> to vector<8x1xf32>
    %c0_21 = arith.constant 0 : index
    %33 = memref.load %arg9[%c0_21] : memref<1xf32, #tpu.memory_space<smem>>
    %34 = vector.broadcast %33 : f32 to vector<8x1xf32>
    %35 = arith.addf %32, %34 : vector<8x1xf32>
    %36 = arith.negf %35 : vector<8x1xf32>
    %37 = math.exp %36 : vector<8x1xf32>
    %cst_22 = arith.constant 1.000000e+00 : f32
    %38 = vector.broadcast %cst_22 : f32 to vector<8x1xf32>
    %39 = arith.addf %38, %37 : vector<8x1xf32>
    %40 = arith.divf %38, %39 : vector<8x1xf32>
    %c0_23 = arith.constant 0 : index
    %c0_24 = arith.constant 0 : index
    %41 = vector.load %arg10[%c0_23, %c0_24] : memref<8x1xf32, #tpu.memory_space<vmem>>, vector<8x1xf32>
    tpu.vector_store %arg10[%c0_23, %c0_24], %40 {strides = array<i32>} : memref<8x1xf32, #tpu.memory_space<vmem>>, vector<8x1xf32>,
    return
  }
  func.func @transform_0(%arg0: i32) -> (i32, i32) {
    %c0_i32 = arith.constant 0 : i32
    %c0_i32_0 = arith.constant 0 : i32
    return %arg0, %c0_i32 : i32, i32
  }
  func.func @transform_1(%arg0: i32) -> (i32, i32) {
    %c0_i32 = arith.constant 0 : i32
    %c0_i32_0 = arith.constant 0 : i32
    %c0_i32_1 = arith.constant 0 : i32
    return %c0_i32, %c0_i32_0 : i32, i32
  }
  func.func @transform_2(%arg0: i32) -> (i32, i32) {
    %c0_i32 = arith.constant 0 : i32
    %c0_i32_0 = arith.constant 0 : i32
    %c0_i32_1 = arith.constant 0 : i32
    return %c0_i32, %c0_i32_0 : i32, i32
  }
  func.func @transform_3(%arg0: i32) -> (i32, i32) {
    %c0_i32 = arith.constant 0 : i32
    %c0_i32_0 = arith.constant 0 : i32
    %c0_i32_1 = arith.constant 0 : i32
    return %c0_i32, %c0_i32_0 : i32, i32
  }
  func.func @transform_4(%arg0: i32) -> (i32, i32) {
    %c0_i32 = arith.constant 0 : i32
    %c0_i32_0 = arith.constant 0 : i32
    %c0_i32_1 = arith.constant 0 : i32
    return %c0_i32, %c0_i32_0 : i32, i32
  }
  func.func @transform_5(%arg0: i32) -> (i32, i32) {
    %c0_i32 = arith.constant 0 : i32
    %c0_i32_0 = arith.constant 0 : i32
    %c0_i32_1 = arith.constant 0 : i32
    return %c0_i32, %c0_i32_0 : i32, i32
  }
  func.func @transform_6(%arg0: i32) -> (i32, i32) {
    %c0_i32 = arith.constant 0 : i32
    %c0_i32_0 = arith.constant 0 : i32
    %c0_i32_1 = arith.constant 0 : i32
    return %c0_i32, %c0_i32_0 : i32, i32
  }
  func.func @transform_7(%arg0: i32) -> (i32, i32) {
    %c0_i32 = arith.constant 0 : i32
    %c0_i32_0 = arith.constant 0 : i32
    %c0_i32_1 = arith.constant 0 : i32
    return %c0_i32, %c0_i32_0 : i32, i32
  }
  func.func @transform_8(%arg0: i32) -> i32 {
    %c0_i32 = arith.constant 0 : i32
    %c0_i32_0 = arith.constant 0 : i32
    return %c0_i32 : i32
  }
  func.func @transform_9(%arg0: i32) -> (i32, i32) {
    %c0_i32 = arith.constant 0 : i32
    %c0_i32_0 = arith.constant 0 : i32
    return %arg0, %c0_i32 : i32, i32
  }
}

</mosaic_0001>

<bundles_post_ra>
// kernel: tpu_custom_call.1
= control target key start
LH: loop header
LB: loop body
LE: loop exit
PB: predicated region body
PF: predicated region fallthrough
CT: control target
= control target key end

     0   :  { %15 = vsyncpa [#allocation4], 0  ;;  %s1441_s0 = inlined_call_operand.hbm [shape: f32[8,32], index: 0, kind: input, shape index: {}]   ;;  %s1442_s1 = inlined_call_operand.hbm [shape: bf16[32,512], index: 1, kind: input, shape index: {}]   ;;  %s1443_s2 = inlined_call_operand.vmem [shape: f32[1,512], index: 2, kind: input, shape index: {}]   ;;  %s1444_s3 = inlined_call_operand.hbm [shape: bf16[512,256], index: 3, kind: input, shape index: {}]   ;;  %s1445_s4 = inlined_call_operand.vmem [shape: f32[1,256], index: 4, kind: input, shape index: {}]   ;;  %s1446_s5 = inlined_call_operand.hbm [shape: bf16[256,128], index: 5, kind: input, shape index: {}]   ;;  %s1447_s6 = inlined_call_operand.vmem [shape: f32[1,128], index: 6, kind: input, shape index: {}]   ;;  %s1448_s7 = inlined_call_operand.vmem [shape: f32[1,128], index: 7, kind: input, shape index: {}]   ;;  %s1449_s8 = inlined_call_operand.<no memory space> [shape: f32[1], index: 8, kind: input, shape index: {}]   ;;  %s1450_s9 = inlined_call_operand.vmem [shape: f32[8,1], index: 9, kind: output, shape index: {}]  }
   0x1   :  { %16 = vsyncpa [#allocation6], 0 }
   0x2   :  { %17 = vsyncpa [#allocation9], 0  ;;  %s1298_s30 = smov [#allocation5]   ;;  %s1204_s13 = scalar_lea.hbm %s1442_s1, 1024 }
   0x3   :  { %s33_s10 = sshll.u32 %s1298_s30, 4  ;;  %p1205_p0 = scmp.ne.s32.totalorder %s1442_s1, %s1204_s13  ;;  %s34_s10 = int_to_ptr.vmem [resolvable:$true] %s33_s10 }
   0x4   :  { %p1208_p1 = scmp.lt.u32.totalorder %s1204_s13, %s1442_s1 }
   0x6   :  { %p1210_p2 = pnand %p1208_p1, %p1205_p0 }
   0x8   :  { %1213 = shalt.err (!%p1210_p2)
}
   0x9   :  { %s1214_s18 = scalar_lea.vmem %s34_s10, 1024  ;;  %p1219_p4 = scmp.lt.s32.totalorder %s34_s10, %s34_s10 }
   0xa   :  { %p1215_p3 = scmp.ne.s32.totalorder %s34_s10, %s1214_s18  ;;  %p1220_p5 = scmp.lt.s32.totalorder %s1214_s18, %s1214_s18 }
   0xc   :  { %p1221_p6 = por %p1220_p5, %p1219_p4 }
   0xe   :  { %p1222_p7 = pnand %p1221_p6, %p1215_p3 }
  0x10   :  { %1225 = shalt.err (!%p1222_p7)
}
  0x11   :  { %s1299_s19 = smov 256   ;;  %s1300_s20 = smov 16  }
  0x12   :  { %39 = dma.hbm_to_vmem [thread:$0]  %s1442_s1, 1024, %s34_s10, [#allocation6], %s1299_s19, %s1299_s19, %s1300_s20  }
  0x13   :  { %s1301_s23 = smov [#allocation3]   ;;  %s1302_s25 = smov [#allocation7]  }
  0x14   :  { %s24_s24 = sshll.u32 %s1301_s23, 4  ;;  %s47_s26 = sshll.u32 %s1302_s25, 4  ;;  %s25_s24 = int_to_ptr.vmem [resolvable:$true] %s24_s24  ;;  %s48_s26 = int_to_ptr.vmem [resolvable:$true] %s47_s26 }
  0x15   :  { %s1226_s29 = scalar_lea.hbm %s1441_s0, 128 }
  0x16   :  { %p1227_p8 = scmp.ne.s32.totalorder %s1441_s0, %s1226_s29  ;;  %p1230_p9 = scmp.lt.u32.totalorder %s1226_s29, %s1441_s0 }
  0x18   :  { %p1232_p10 = pnand %p1230_p9, %p1227_p8 }
  0x1a   :  { %1235 = shalt.err (!%p1232_p10)
}
  0x1b   :  { %s1236_s1 = scalar_lea.vmem %s25_s24, 128  ;;  %p1241_p12 = scmp.lt.s32.totalorder %s25_s24, %s25_s24 }
  0x1c   :  { %p1237_p11 = scmp.ne.s32.totalorder %s25_s24, %s1236_s1  ;;  %p1242_p13 = scmp.lt.s32.totalorder %s1236_s1, %s1236_s1 }
  0x1e   :  { %p1243_p0 = por %p1242_p13, %p1241_p12 }
  0x20   :  { %p1244_p1 = pnand %p1243_p0, %p1237_p11 }
  0x22   :  { %1247 = shalt.err (!%p1244_p1)
}
  0x23   :  { %27 = dma.hbm_to_vmem [thread:$0]  %s1441_s0, 128, %s25_s24, [#allocation4]  }
  0x24   :  { %s1248_s17 = scalar_lea.hbm %s1444_s3, 8192 }
  0x25   :  { %p1249_p2 = scmp.ne.s32.totalorder %s1444_s3, %s1248_s17  ;;  %p1252_p3 = scmp.lt.u32.totalorder %s1248_s17, %s1444_s3 }
  0x27   :  { %p1254_p4 = pnand %p1252_p3, %p1249_p2 }
  0x29   :  { %1257 = shalt.err (!%p1254_p4)
}
  0x2a   :  { %s1258_s22 = scalar_lea.vmem %s48_s26, 8192  ;;  %p1263_p6 = scmp.lt.s32.totalorder %s48_s26, %s48_s26 }
  0x2b   :  { %p1259_p5 = scmp.ne.s32.totalorder %s48_s26, %s1258_s22  ;;  %p1264_p7 = scmp.lt.s32.totalorder %s1258_s22, %s1258_s22 }
  0x2d   :  { %p1265_p8 = por %p1264_p7, %p1263_p6 }
  0x2f   :  { %p1266_p9 = pnand %p1265_p8, %p1259_p5 }
  0x31   :  { %1269 = shalt.err (!%p1266_p9)
}
  0x32   :  { %s1303_s0 = smov 128   ;;  %s1304_s23 = smov 8  }
  0x33   :  { %53 = dma.hbm_to_vmem [thread:$0]  %s1444_s3, 8192, %s48_s26, [#allocation6], %s1303_s0, %s1303_s0, %s1304_s23  }
  0x34   :  { %s1305_s27 = smov [#allocation8]   ;;  %s1270_s11 = scalar_lea.hbm %s1446_s5, 2048 }
  0x35   :  { %s61_s28 = sshll.u32 %s1305_s27, 4  ;;  %p1271_p10 = scmp.ne.s32.totalorder %s1446_s5, %s1270_s11  ;;  %s62_s28 = int_to_ptr.vmem [resolvable:$true] %s61_s28 }
  0x36   :  { %p1274_p11 = scmp.lt.u32.totalorder %s1270_s11, %s1446_s5 }
  0x38   :  { %p1276_p12 = pnand %p1274_p11, %p1271_p10 }
  0x3a   :  { %1279 = shalt.err (!%p1276_p12)
}
  0x3b   :  { %s1280_s14 = scalar_lea.vmem %s62_s28, 2048  ;;  %p1285_p0 = scmp.lt.s32.totalorder %s62_s28, %s62_s28 }
  0x3c   :  { %p1281_p13 = scmp.ne.s32.totalorder %s62_s28, %s1280_s14  ;;  %p1286_p1 = scmp.lt.s32.totalorder %s1280_s14, %s1280_s14 }
  0x3e   :  { %p1287_p2 = por %p1286_p1, %p1285_p0 }
  0x40   :  { %p1288_p3 = pnand %p1287_p2, %p1281_p13 }
  0x42   :  { %1291 = shalt.err (!%p1288_p3)
}
  0x43   :  { %s1306_s3 = smov 64   ;;  %s1307_s26 = smov 4  }
  0x44   :  { %67 = dma.hbm_to_vmem [thread:$0]  %s1446_s5, 2048, %s62_s28, [#allocation9], %s1306_s3, %s1306_s3, %s1307_s26  }
  0x45   :  { %1292 = dma.done.wait [#allocation4], 128  }
  0x46   :  { %1293 = vsyncadd [#allocation4], 4294967168 }
  0x47   :  { %1294 = dma.done.wait [#allocation6], 9216  }
  0x48   :  { %1295 = vsyncadd [#allocation6], 4294958080 }
  0x49   :  { %1296 = dma.done.wait [#allocation9], 2048  }
  0x4a   :  { %1297 = vsyncadd [#allocation9], 4294965248  ;;  %v1308_v0 = vmov 0   ;;  %v1076_v1 = vld [vmem:[#allocation5 + $0x4] ss:$16 sps:$4 sm:$0xff]   ;;  %v87_v5 = vld [vmem:[#allocation3] sm:$0xff] }
  0x4b   :  { %195 = vmatprep.mubr.bf16.mxu0 %v1308_v0  ;;  %v1078_v2 = vld [vmem:[#allocation5] ss:$16 sps:$4 sm:$0xff]   ;;  %163 = vmatprep.subr.bf16.mxu0 %v1076_v1  ;;  %v1079_v3 = vld [vmem:[#allocation5 + $0x24] ss:$16 sps:$4 sm:$0xff]   ;;  %v1084_v6 = vld [vmem:[#allocation5 + $0xc] ss:$16 sps:$4 sm:$0xff]   ;;  %v88_v8 = vpack.c.bf16 %v87_v5, %v87_v5 }
  0x4c   :  { %v1081_v4 = vld [vmem:[#allocation5 + $0x20] ss:$16 sps:$4 sm:$0xff]   ;;  %164 = vmatpush1.bf16.msra.mxu0 %v1078_v2  ;;  %v1082_v7 = vld [vmem:[#allocation5 + $0x8] ss:$16 sps:$4 sm:$0xff]   ;;  %v1088_v9 = vld [vmem:[#allocation7 + $0x4] ss:$8 sps:$4 sm:$0xff]  }
  0x4d   :  { %165 = vmatprep.subr.bf16.mxu0 %v1079_v3  ;;  %v1090_v10 = vld [vmem:[#allocation7] ss:$8 sps:$4 sm:$0xff]   ;;  %vm159_vm0 = vcmask 261120   ;;  %v1091_v11 = vld [vmem:[#allocation7 + $0x14] ss:$8 sps:$4 sm:$0xff]   ;;  %653 = vmatprep.subr.bf16.mxu1 %v1088_v9  ;;  %vm937_vm1 = vcmask 7168  }
  0x4e   :  { %v1087_v12 = vld [vmem:[#allocation5 + $0x2c] ss:$16 sps:$4 sm:$0xff]   ;;  %654 = vmatpush1.bf16.msra.mxu1 %v1090_v10  ;;  %v1093_v13 = vld [vmem:[#allocation7 + $0x10] ss:$8 sps:$4 sm:$0xff]   ;;  %v1099_v17 = vld [vmem:[#allocation7 + $0x20] ss:$8 sps:$4 sm:$0xff]  }
  0x4f   :  { %655 = vmatprep.subr.bf16.mxu1 %v1091_v11  ;;  %v1094_v14 = vld [vmem:[#allocation7 + $0x24] ss:$8 sps:$4 sm:$0xff]   ;;  %v1085_v15 = vld [vmem:[#allocation5 + $0x28] ss:$16 sps:$4 sm:$0xff]   ;;  %v1100_v18 = vld [vmem:[#allocation7 + $0x34] ss:$8 sps:$4 sm:$0xff]  }
  0x50   :  { %166 = vmatpush1.bf16.msra.mxu0 %v1081_v4  ;;  %v1098_v16 = vld [vmem:[#allocation7 + $0x104] ss:$8 sps:$4 sm:$0xff]   ;;  %v1096_v19 = vld [vmem:[#allocation7 + $0x100] ss:$8 sps:$4 sm:$0xff]   ;;  %v1104_v20 = vld [vmem:[#allocation7 + $0x114] ss:$8 sps:$4 sm:$0xff]  }
  0x51   :  { %204 = vmatprep.subr.bf16.mxu0 %v1084_v6  ;;  %v1105_v21 = vld [vmem:[#allocation7 + $0x30] ss:$8 sps:$4 sm:$0xff]   ;;  %v1106_v22 = vld [vmem:[#allocation7 + $0x44] ss:$8 sps:$4 sm:$0xff]   ;;  %v1111_v25 = vld [vmem:[#allocation7 + $0x40] ss:$8 sps:$4 sm:$0xff]  }
  0x52   :  { %656 = vmatpush1.bf16.msra.mxu1 %v1093_v13  ;;  %v1102_v23 = vld [vmem:[#allocation7 + $0x110] ss:$8 sps:$4 sm:$0xff]   ;;  %v1110_v24 = vld [vmem:[#allocation7 + $0x124] ss:$8 sps:$4 sm:$0xff]   ;;  %v1112_v26 = vld [vmem:[#allocation7 + $0x54] ss:$8 sps:$4 sm:$0xff]  }
  0x53   :  { %954 = vmatmul.mubr.msk.bf16.vlgmr.msra.gmra.mrb[0].mxu0 %vm159_vm0, %v88_v8  ;;  %657 = vmatprep.subr.bf16.mxu1 %v1094_v14  ;;  %v1108_v27 = vld [vmem:[#allocation7 + $0x120] ss:$8 sps:$4 sm:$0xff]   ;;  %v1116_v28 = vld [vmem:[#allocation7 + $0x134] ss:$8 sps:$4 sm:$0xff]   ;;  %v1117_v29 = vld [vmem:[#allocation7 + $0x50] ss:$8 sps:$4 sm:$0xff]  }
  0x54   :  { %205 = vmatpush1.bf16.msra.mxu0 %v1082_v7  ;;  %236 = vmatprep.mubr.bf16.mxu0 %v1308_v0  ;;  %v1118_v30 = vld [vmem:[#allocation7 + $0x64] ss:$8 sps:$4 sm:$0xff]   ;;  %v1114_v31 = vld [vmem:[#allocation7 + $0x130] ss:$8 sps:$4 sm:$0xff]   ;;  %v1123_v33 = vld [vmem:[#allocation7 + $0x60] ss:$8 sps:$4 sm:$0xff]  }
  0x55   :  { %206 = vmatprep.subr.bf16.mxu0 %v1087_v12  ;;  %v1122_v32 = vld [vmem:[#allocation7 + $0x144] ss:$8 sps:$4 sm:$0xff]   ;;  %v1124_v34 = vld [vmem:[#allocation7 + $0x74] ss:$8 sps:$4 sm:$0xff]   ;;  %v1120_v35 = vld [vmem:[#allocation7 + $0x140] ss:$8 sps:$4 sm:$0xff]   ;;  %v99_v12 = vlaneseq }
  0x56   :  { %658 = vmatpush1.bf16.msra.mxu1 %v1099_v17  ;;  %v1128_v36 = vld [vmem:[#allocation7 + $0x154] ss:$8 sps:$4 sm:$0xff]   ;;  %v1129_v37 = vld [vmem:[#allocation7 + $0x70] ss:$8 sps:$4 sm:$0xff]   ;;  %v1130_v38 = vld [vmem:[#allocation7 + $0x84] ss:$8 sps:$4 sm:$0xff]  }
  0x57   :  { %659 = vmatprep.subr.bf16.mxu1 %v1100_v18  ;;  %v1126_v39 = vld [vmem:[#allocation7 + $0x150] ss:$8 sps:$4 sm:$0xff]   ;;  %v1134_v40 = vld [vmem:[#allocation7 + $0x164] ss:$8 sps:$4 sm:$0xff]   ;;  %v1132_v41 = vld [vmem:[#allocation7 + $0x160] ss:$8 sps:$4 sm:$0xff]  }
  0x58   :  { %207 = vmatpush1.bf16.msra.mxu0 %v1085_v15  ;;  %v1135_v42 = vld [vmem:[#allocation7 + $0x80] ss:$8 sps:$4 sm:$0xff]   ;;  %v1136_v43 = vld [vmem:[#allocation7 + $0x94] ss:$8 sps:$4 sm:$0xff]   ;;  %v1141_v45 = vld [vmem:[#allocation7 + $0x90] ss:$8 sps:$4 sm:$0xff]  }
  0x59   :  { %694 = vmatprep.subr.bf16.mxu0 %v1098_v16  ;;  %v1140_v44 = vld [vmem:[#allocation7 + $0x174] ss:$8 sps:$4 sm:$0xff]   ;;  %v1142_v46 = vld [vmem:[#allocation7 + $0xa4] ss:$8 sps:$4 sm:$0xff]   ;;  %v1138_v47 = vld [vmem:[#allocation7 + $0x170] ss:$8 sps:$4 sm:$0xff]  }
  0x5a   :  { %660 = vmatpush1.bf16.msra.mxu1 %v1105_v21  ;;  %v1146_v48 = vld [vmem:[#allocation7 + $0x184] ss:$8 sps:$4 sm:$0xff]   ;;  %v1147_v49 = vld [vmem:[#allocation7 + $0xa0] ss:$8 sps:$4 sm:$0xff]   ;;  %v1148_v50 = vld [vmem:[#allocation7 + $0xb4] ss:$8 sps:$4 sm:$0xff]  }
  0x5b   :  { %955 = vmatmul.mubr.msk.bf16.vlgmr.msra.gmra.mrb[4].mxu0 %vm159_vm0, %v88_v8  ;;  %661 = vmatprep.subr.bf16.mxu1 %v1106_v22  ;;  %v1144_v51 = vld [vmem:[#allocation7 + $0x180] ss:$8 sps:$4 sm:$0xff]   ;;  %v1152_v52 = vld [vmem:[#allocation7 + $0x194] ss:$8 sps:$4 sm:$0xff]   ;;  %v1153_v53 = vld [vmem:[#allocation7 + $0xb0] ss:$8 sps:$4 sm:$0xff]  }
  0x5c   :  { %695 = vmatpush1.bf16.msra.mxu0 %v1096_v19  ;;  %v1154_v54 = vld [vmem:[#allocation7 + $0xc4] ss:$8 sps:$4 sm:$0xff]   ;;  %v1150_v55 = vld [vmem:[#allocation7 + $0x190] ss:$8 sps:$4 sm:$0xff]   ;;  %v1159_v57 = vld [vmem:[#allocation7 + $0xc0] ss:$8 sps:$4 sm:$0xff]  }
  0x5d   :  { %696 = vmatprep.subr.bf16.mxu0 %v1104_v20  ;;  %v1158_v56 = vld [vmem:[#allocation7 + $0x1a4] ss:$8 sps:$4 sm:$0xff]   ;;  %v1160_v58 = vld [vmem:[#allocation7 + $0xd4] ss:$8 sps:$4 sm:$0xff]   ;;  %v1156_v59 = vld [vmem:[#allocation7 + $0x1a0] ss:$8 sps:$4 sm:$0xff]  }
  0x5e   :  { %662 = vmatpush1.bf16.msra.mxu1 %v1111_v25  ;;  %v1164_v60 = vld [vmem:[#allocation7 + $0x1b4] ss:$8 sps:$4 sm:$0xff]   ;;  %v1162_v61 = vld [vmem:[#allocation7 + $0x1b0] ss:$8 sps:$4 sm:$0xff]   ;;  %v1166_v63 = vld [vmem:[#allocation7 + $0xe4] ss:$8 sps:$4 sm:$0xff]  }
  0x5f   :  { %663 = vmatprep.subr.bf16.mxu1 %v1112_v26  ;;  %v1165_v62 = vld [vmem:[#allocation7 + $0xd0] ss:$8 sps:$4 sm:$0xff]   ;;  %v1170_v0 = vld [vmem:[#allocation7 + $0x1c4] ss:$8 sps:$4 sm:$0xff]   ;;  %v1168_v1 = vld [vmem:[#allocation7 + $0x1c0] ss:$8 sps:$4 sm:$0xff]  }
  0x60   :  { %697 = vmatpush1.bf16.msra.mxu0 %v1102_v23  ;;  %v1171_v2 = vld [vmem:[#allocation7 + $0xe0] ss:$8 sps:$4 sm:$0xff]   ;;  %v1172_v3 = vld [vmem:[#allocation7 + $0xf4] ss:$8 sps:$4 sm:$0xff]   ;;  %v1174_v5 = vld [vmem:[#allocation7 + $0x1d0] ss:$8 sps:$4 sm:$0xff]  }
  0x61   :  { %698 = vmatprep.subr.bf16.mxu0 %v1110_v24  ;;  %v1176_v4 = vld [vmem:[#allocation7 + $0x1d4] ss:$8 sps:$4 sm:$0xff]   ;;  %v1177_v6 = vld [vmem:[#allocation7 + $0xf0] ss:$8 sps:$4 sm:$0xff]   ;;  %v1180_v7 = vld [vmem:[#allocation7 + $0x1e4] ss:$8 sps:$4 sm:$0xff]  }
  0x62   :  { %664 = vmatpush1.bf16.msra.mxu1 %v1117_v29  ;;  %v1178_v8 = vld [vmem:[#allocation7 + $0x1e0] ss:$8 sps:$4 sm:$0xff]   ;;  %v1183_v9 = vld [vmem:[#allocation7 + $0x1f4] ss:$8 sps:$4 sm:$0xff]   ;;  %v1181_v10 = vld [vmem:[#allocation7 + $0x1f0] ss:$8 sps:$4 sm:$0xff]  }
  0x63   :  { %665 = vmatprep.subr.bf16.mxu1 %v1118_v30  ;;  %v1184_v11 = vld [vmem:[#allocation8 + $0x40] sm:$0xff]   ;;  %v1409_v13 = vshrl.u32 %v99_v12, 7  ;;  %v97_v15 = vld [vmem:[%s1443_s2] sm:$0xf] }
  0x64   :  { %699 = vmatpush1.bf16.msra.mxu0 %v1108_v27 }
  0x65   :  { %700 = vmatprep.subr.bf16.mxu0 %v1116_v28  ;;  %v101_v14 = vsub.s32 0, %v1409_v13  ;;  %v105_v16 = vsub.s32 1, %v1409_v13  ;;  %v109_v22 = vsub.s32 2, %v1409_v13  ;;  %v113_v25 = vsub.s32 3, %v1409_v13  ;;  %v1020_v13 = vld [vmem:[%s1447_s6] ss:$0 sm:$0xff] }
  0x66   :  { %666 = vmatpush1.bf16.msra.mxu1 %v1123_v33 }
  0x67   :  { %667 = vmatprep.subr.bf16.mxu1 %v1124_v34  ;;  %v102_v17 = vrot.slane %v97_v15, %v101_v14  ;;  %v106_v18 = vrot.slane %v97_v15, %v105_v16  ;;  %v110_v30 = vrot.slane %v97_v15, %v109_v22 }
  0x68   :  { %701 = vmatpush1.bf16.msra.mxu0 %v1114_v31  ;;  %v114_v31 = vrot.slane %v97_v15, %v113_v25 }
  0x69   :  { %702 = vmatprep.subr.bf16.mxu0 %v1122_v32 }
  0x6a   :  { %668 = vmatpush1.bf16.msra.mxu1 %v1129_v37 }
  0x6b   :  { %669 = vmatprep.subr.bf16.mxu1 %v1130_v38 }
  0x6c   :  { %703 = vmatpush1.bf16.msra.mxu0 %v1120_v35  ;;  %v1185_v35 = vld [vmem:[#allocation8] sm:$0xff]  }
  0x6d   :  { %704 = vmatprep.subr.bf16.mxu0 %v1128_v36 }
  0x6e   :  { %670 = vmatpush1.bf16.msra.mxu1 %v1135_v42 }
  0x6f   :  { %671 = vmatprep.subr.bf16.mxu1 %v1136_v43 }
  0x70   :  { %705 = vmatpush1.bf16.msra.mxu0 %v1126_v39  ;;  %v1186_v39 = vld [vmem:[#allocation8 + $0x48] sm:$0xff]  }
  0x71   :  { %706 = vmatprep.subr.bf16.mxu0 %v1134_v40 }
  0x72   :  { %672 = vmatpush1.bf16.msra.mxu1 %v1141_v45  ;;  %v1187_v45 = vld [vmem:[#allocation8 + $0x8] sm:$0xff]  }
  0x73   :  { %673 = vmatprep.subr.bf16.mxu1 %v1142_v46 }
  0x74   :  { %707 = vmatpush1.bf16.msra.mxu0 %v1132_v41 }
  0x75   :  { %708 = vmatprep.subr.bf16.mxu0 %v1140_v44 }
  0x76   :  { %674 = vmatpush1.bf16.msra.mxu1 %v1147_v49 }
  0x77   :  { %675 = vmatprep.subr.bf16.mxu1 %v1148_v50  ;;  %v1189_v50 = vld [vmem:[#allocation8 + $0x10] sm:$0xff]  }
  0x78   :  { %709 = vmatpush1.bf16.msra.mxu0 %v1138_v47  ;;  %v1188_v47 = vld [vmem:[#allocation8 + $0x50] sm:$0xff]  }
  0x79   :  { %710 = vmatprep.subr.bf16.mxu0 %v1146_v48 }
  0x7a   :  { %676 = vmatpush1.bf16.msra.mxu1 %v1153_v53  ;;  %v1191_v53 = vld [vmem:[#allocation8 + $0x18] sm:$0xff]  }
  0x7b   :  { %677 = vmatprep.subr.bf16.mxu1 %v1154_v54  ;;  %v1192_v54 = vld [vmem:[#allocation8 + $0x60] sm:$0xff]  }
  0x7c   :  { %711 = vmatpush1.bf16.msra.mxu0 %v1144_v51 }
  0x7d   :  { %712 = vmatprep.subr.bf16.mxu0 %v1152_v52  ;;  %v1190_v52 = vld [vmem:[#allocation8 + $0x58] sm:$0xff]  }
  0x7e   :  { %678 = vmatpush1.bf16.msra.mxu1 %v1159_v57  ;;  %v1195_v57 = vld [vmem:[#allocation8 + $0x28] sm:$0xff]  }
  0x7f   :  { %679 = vmatprep.subr.bf16.mxu1 %v1160_v58  ;;  %v1196_v58 = vld [vmem:[#allocation8 + $0x70] sm:$0xff]  }
  0x80   :  { %713 = vmatpush1.bf16.msra.mxu0 %v1150_v55  ;;  %v1193_v55 = vld [vmem:[#allocation8 + $0x20] sm:$0xff]  }
  0x81   :  { %714 = vmatprep.subr.bf16.mxu0 %v1158_v56  ;;  %v1194_v56 = vld [vmem:[#allocation8 + $0x68] sm:$0xff]  }
  0x82   :  { %680 = vmatpush1.bf16.msra.mxu1 %v1165_v62  ;;  %v321_v62 = vld [vmem:[%s1445_s4] sm:$0x3] }
  0x83   :  { %681 = vmatprep.subr.bf16.mxu1 %v1166_v63 }
  0x84   :  { %715 = vmatpush1.bf16.msra.mxu0 %v1156_v59  ;;  %v1197_v59 = vld [vmem:[#allocation8 + $0x30] sm:$0xff]  }
  0x85   :  { %716 = vmatprep.subr.bf16.mxu0 %v1164_v60  ;;  %v1198_v60 = vld [vmem:[#allocation8 + $0x78] sm:$0xff]  }
  0x86   :  { %682 = vmatpush1.bf16.msra.mxu1 %v1171_v2  ;;  %v326_v2 = vrot.slane %v321_v62, %v101_v14 }
  0x87   :  { %683 = vmatprep.subr.bf16.mxu1 %v1172_v3 }
  0x88   :  { %717 = vmatpush1.bf16.msra.mxu0 %v1162_v61  ;;  %v1199_v61 = vld [vmem:[#allocation8 + $0x38] sm:$0xff]  }
  0x89   :  { %718 = vmatprep.subr.bf16.mxu0 %v1170_v0 }
  0x8a   :  { %684 = vmatpush1.bf16.msra.mxu1 %v1177_v6 }
  0x8b   :  { %1039 = vmatprep.subr.bf16.mxu1 %v1184_v11 }
  0x8c   :  { %719 = vmatpush1.bf16.msra.mxu0 %v1168_v1 }
  0x8d   :  { %720 = vmatprep.subr.bf16.mxu0 %v1176_v4  ;;  %v330_v4 = vrot.slane %v321_v62, %v105_v16 }
  0x90   :  { %721 = vmatpush1.bf16.msra.mxu0 %v1174_v5 }
  0x91   :  { %722 = vmatprep.subr.bf16.mxu0 %v1180_v7 }
  0x94   :  { %723 = vmatpush1.bf16.msra.mxu0 %v1178_v8 }
  0x95   :  { %724 = vmatprep.subr.bf16.mxu0 %v1183_v9 }
  0x98   :  { %725 = vmatpush1.bf16.msra.mxu0 %v1181_v10 }
 0x126   :  { %v197_v19 = vpop.f32.mrb[0].mxu0 }
 0x127   :  { %v198_v20 = vadd.f32 %v197_v19, %v102_v17  ;;  %v199_v21 = vpop.f32.mrb[1].mxu0 }
 0x128   :  { %v200_v23 = vadd.f32 %v199_v21, %v106_v18  ;;  %v201_v24 = vpop.f32.mrb[2].mxu0 }
 0x129   :  { %v245_v26 = vmul.f32 0.2, %v198_v20  ;;  %v202_v27 = vpop.f32.mrb[3].mxu0 }
 0x12a   :  { %v246_v28 = vmul.f32 0.2, %v200_v23  ;;  %v1037_v27 = vld [vmem:[%s1448_s7] ss:$0 sm:$0xff] }
 0x12b   :  { %v249_v29 = vmax.f32 %v198_v20, %v245_v26 }
 0x12c   :  { %v250_v32 = vmax.f32 %v200_v23, %v246_v28 }
 0x12d   :  { %v253_v36 = vpack.c.bf16 %v249_v29, %v249_v29 }
 0x12e   :  { %v238_v33 = vpop.f32.mrb[4].mxu0  ;;  %v254_v34 = vpack.c.bf16 %v250_v32, %v250_v32 }
 0x12f   :  { %v239_v37 = vadd.f32 %v238_v33, %v110_v30  ;;  %v240_v38 = vpop.f32.mrb[5].mxu0  ;;  %v929_v30 = vstv %s1449_s8 }
 0x130   :  { %v241_v40 = vadd.f32 %v240_v38, %v114_v31  ;;  %v242_v41 = vpop.f32.mrb[6].mxu0  ;;  %685 = vmatprep.mubr.bf16.mxu1 %v254_v34 }
 0x131   :  { %v247_v42 = vmul.f32 0.2, %v239_v37  ;;  %v243_v43 = vpop.f32.mrb[7].mxu0  ;;  %686 = vmatmul.mubr.bf16.vlgmr.msra.gmra.mrb[0].mxu1 %v253_v36 }
 0x132   :  { %v248_v44 = vmul.f32 0.2, %v241_v40  ;;  %1040 = vmatpush3.bf16.msra.mxu1 %v1185_v35 }
 0x133   :  { %v251_v46 = vmax.f32 %v239_v37, %v247_v42  ;;  %1041 = vmatprep.subr.bf16.mxu1 %v1186_v39 }
 0x134   :  { %v252_v48 = vmax.f32 %v241_v40, %v248_v44 }
 0x135   :  { %v255_v51 = vpack.c.bf16 %v251_v46, %v251_v46 }
 0x136   :  { %v256_v49 = vpack.c.bf16 %v252_v48, %v252_v48  ;;  %1042 = vmatpush3.bf16.msra.mxu1 %v1187_v45 }
 0x137   :  { %1043 = vmatprep.subr.bf16.mxu1 %v1188_v47 }
 0x138   :  { %726 = vmatprep.mubr.bf16.mxu0 %v256_v49 }
 0x139   :  { %727 = vmatmul.mubr.bf16.vlgmr.msra.gmra.mrb[8].mxu0 %v255_v51 }
 0x13a   :  { %1044 = vmatpush3.bf16.msra.mxu1 %v1189_v50 }
 0x13b   :  { %1045 = vmatprep.subr.bf16.mxu1 %v1190_v52 }
 0x13e   :  { %1046 = vmatpush3.bf16.msra.mxu1 %v1191_v53 }
 0x13f   :  { %1047 = vmatprep.subr.bf16.mxu1 %v1192_v54 }
 0x142   :  { %1048 = vmatpush3.bf16.msra.mxu1 %v1193_v55 }
 0x143   :  { %1049 = vmatprep.subr.bf16.mxu1 %v1194_v56 }
 0x146   :  { %1050 = vmatpush3.bf16.msra.mxu1 %v1195_v57 }
 0x147   :  { %1051 = vmatprep.subr.bf16.mxu1 %v1196_v58 }
 0x14a   :  { %1052 = vmatpush3.bf16.msra.mxu1 %v1197_v59 }
 0x14b   :  { %1053 = vmatprep.subr.bf16.mxu1 %v1198_v60 }
 0x14e   :  { %1054 = vmatpush3.bf16.msra.mxu1 %v1199_v61 }
 0x204   :  { %v687_v63 = vpop.f32.mrb[0].mxu1 }
 0x205   :  { %v689_v0 = vpop.f32.mrb[1].mxu1  ;;  %v688_v5 = vadd.f32 %v687_v63, %v326_v2 }
 0x206   :  { %v691_v1 = vpop.f32.mrb[2].mxu1  ;;  %v690_v6 = vadd.f32 %v689_v0, %v330_v4 }
 0x207   :  { %v692_v3 = vpop.f32.mrb[3].mxu1 }
 0x20c   :  { %v728_v7 = vpop.f32.mrb[8].mxu0 }
 0x20d   :  { %v729_v8 = vadd.f32 %v728_v7, %v688_v5  ;;  %v730_v9 = vpop.f32.mrb[9].mxu0 }
 0x20e   :  { %v731_v10 = vadd.f32 %v730_v9, %v690_v6  ;;  %v732_v11 = vpop.f32.mrb[10].mxu0 }
 0x20f   :  { %v735_v12 = vmul.f32 0.2, %v729_v8  ;;  %v733_v15 = vpop.f32.mrb[11].mxu0 }
 0x210   :  { %v736_v17 = vmul.f32 0.2, %v731_v10 }
 0x211   :  { %v737_v18 = vmax.f32 %v729_v8, %v735_v12 }
 0x212   :  { %v738_v19 = vmax.f32 %v731_v10, %v736_v17 }
 0x213   :  { %v739_v21 = vpack.c.bf16 %v737_v18, %v737_v18 }
 0x214   :  { %v740_v20 = vpack.c.bf16 %v738_v19, %v738_v19 }
 0x216   :  { %908 = vmatprep.mubr.bf16.mxu1 %v740_v20 }
 0x217   :  { %909 = vmatmul.mubr.bf16.vlgmr.msra.gmra.mrb[4].mxu1 %v739_v21 }
 0x2ea   :  { %v1055_v14 = vpop.f32.mrb[4].mxu1 }
 0x2eb   :  { %v1056_v16 = vpop.f32.mrb[5].mxu1 }
 0x2ec   :  { %v1057_v22 = vadd.f32 %v1056_v16, %v1055_v14  ;;  %v1058_v23 = vpop.f32.mrb[6].mxu1 }
 0x2ed   :  { %v1059_v24 = vpop.f32.mrb[7].mxu1 }
 0x2ee   :  { %v911_v25 = vadd.f32 %v1057_v22, %v1020_v13 }
 0x2f0   :  { %v916_v26 = vmul.f32 0.2, %v911_v25 }
 0x2f2   :  { %v917_v28 = vmax.f32 %v911_v25, %v916_v26 }
 0x2f4   :  { %v925_v29 = vmul.f32 %v1037_v27, %v917_v28 }
 0x2f6   :  { %926 = vadd.xlane.f32.xlu0 %v925_v29 }
 0x383   :  { %v927_v31 = vpop.xlane.xlu0 %926 }
 0x384   :  { %v930_v32 = vadd.f32 %v929_v30, %v927_v31 }
 0x386   :  { %v1038_v33 = vmul.f32 -1.442695, %v930_v32 }
 0x388   :  { %1200 = vpow2.f32 %v1038_v33 }
 0x392   :  { %v1201_v34 = vpop.eup %1200 }
 0x393   :  { %v934_v35 = vadd.f32 1.0, %v1201_v34 }
 0x395   :  { %1202 = vrcp.f32 %v934_v35 }
 0x39f   :  { %v1203_v36 = vpop.eup %1202 }
 0x3a0   :  { %938 = vst.msk [vmem:[%s1450_s9] sm:$0xff] %vm937_vm1, %v1203_v36 }
 0x3a1   :  { %943 = vsyncpa [#allocation4], 1 }
 0x3a2   :  { %944 = vsyncpa [#allocation6], 1 }
 0x3a3   :  { %945 = vsyncpa [#allocation9], 1 }

</bundles_post_ra>
